<compile_context>
chip_gen: v5e
topology: v5e:2x2
jax: 0.10.0
libtpu: 0.0.40
codegen_flags: <defaults>
</compile_context>

<pallas_src>
import math

import jax
import jax.numpy as jnp
from jax.experimental import pallas as pl
from jax.experimental.pallas import tpu as pltpu


# -----------------------------------------------------------------------------
# Kernel
#   x_ref       : (size_in, tb)    batch on lanes
#   smat_ref    : (HF, size_in)    HF = size_in * (num_terms // 2)
#                                  smat[i*half + t, i] = freq0[t]
#   ph_cos_ref  : (HF, 1)          phase[0, :] as a column (zeros if no phase)
#   ph_sin_ref  : (HF, 1)          phase[1, :] as a column
#   amp_cos_ref : (HF, 1)          amp[0, :HF] as a column
#   amp_sin_ref : (HF, 1)          amp[0, HF:] as a column
#   out_ref     : (2*HF, tb)       [cos block ; sin block], lane-dense store
# -----------------------------------------------------------------------------
def fourier_kernel(x_ref, smat_ref, ph_cos_ref, ph_sin_ref,
                   amp_cos_ref, amp_sin_ref, out_ref):
    x = x_ref[...]                                            # (size_in, tb)

    # inner[i*half + t, b] = x[b, i] * freq0[t]  — one tiny MXU matmul.
    inner = jnp.dot(smat_ref[...], x,
                    preferred_element_type=jnp.float32)       # (HF, tb)

    cos_part = jnp.cos(inner + ph_cos_ref[...]) * amp_cos_ref[...]
    sin_part = jnp.sin(inner + ph_sin_ref[...]) * amp_sin_ref[...]

    # Both halves are HF rows; concat along sublanes then one full-tile store.
    out_ref[...] = jnp.concatenate([cos_part, sin_part], axis=0)


# -----------------------------------------------------------------------------
# Parameter construction (mirrors reset_parameters semantics).
# -----------------------------------------------------------------------------
def init_params(key, size_in, num_terms, phase_lag=True):
    if num_terms % 2:
        num_terms -= 1                                        # reference behavior
    half = num_terms // 2

    # freq[0, t] = 2*t*pi ; freq[1, t] = 2*(t+1)*pi (row 1 unused in forward).
    t = jnp.arange(half, dtype=jnp.float32)
    freq = jnp.stack([2.0 * t * math.pi, 2.0 * (t + 1.0) * math.pi], axis=0)

    n_amp = num_terms * size_in
    # kaiming_uniform_(a=sqrt(5)) on a (1, n_amp) tensor -> bound = 1/sqrt(n_amp)
    bound = 1.0 / math.sqrt(n_amp) if n_amp > 0 else 0.0
    k_amp, k_ph = jax.random.split(key)
    amp = jax.random.uniform(k_amp, (1, n_amp), jnp.float32, -bound, bound)
    phase = (jax.random.uniform(k_ph, (2, size_in * half), jnp.float32,
                                -bound, bound)
             if phase_lag else None)
    return freq, amp, phase, num_terms


def prepare_kernel_params(freq, amp, phase, size_in):
    """Precompute the block-diagonal freq matrix and column-shaped phase/amp."""
    half = freq.shape[1]
    hf = size_in * half
    freq0_col = freq[0, :].reshape(half, 1)
    # smat[i*half + t, i] = freq0[t]
    smat = jnp.kron(jnp.eye(size_in, dtype=jnp.float32), freq0_col)  # (HF, size_in)

    if phase is None:
        ph_cos = jnp.zeros((hf, 1), jnp.float32)
        ph_sin = jnp.zeros((hf, 1), jnp.float32)
    else:
        ph_cos = phase[0, :].reshape(hf, 1)
        ph_sin = phase[1, :].reshape(hf, 1)

    amp_cos = amp[0, :hf].reshape(hf, 1)
    amp_sin = amp[0, hf:].reshape(hf, 1)
    return smat, ph_cos, ph_sin, amp_cos, amp_sin


# -----------------------------------------------------------------------------
# pallas_call wrapper
# -----------------------------------------------------------------------------
def fourier_forward(x, kparams, *, tb=128):
    B, size_in = x.shape
    smat = kparams[0]
    hf = smat.shape[0]
    out_feats = 2 * hf

    assert tb % 128 == 0, "tb must be a multiple of 128 (lane-dense blocks)"
    assert B % tb == 0, "B must be a multiple of tb"

    x_t = x.T                                                 # (size_in, B)

    def full_spec(arr):
        nd = arr.ndim
        return pl.BlockSpec(arr.shape, lambda i, _nd=nd: (0,) * _nd)

    in_specs = ([pl.BlockSpec((size_in, tb), lambda i: (0, i))]
                + [full_spec(p) for p in kparams])
    out_spec = pl.BlockSpec((out_feats, tb), lambda i: (0, i))

    out_t = pl.pallas_call(
        fourier_kernel,
        out_shape=jax.ShapeDtypeStruct((out_feats, B), jnp.float32),
        grid=(B // tb,),
        in_specs=in_specs,
        out_specs=out_spec,
        compiler_params=pltpu.CompilerParams(
            dimension_semantics=("parallel",)),
    )(x_t, *kparams)
    return out_t.T                                            # (B, out_feats)


# -----------------------------------------------------------------------------
# Pure-JAX reference mirroring the PyTorch forward (including the freq[0,:]
# bug for both cos and sin inner terms).
# -----------------------------------------------------------------------------
def fourier_reference(x, freq, amp, phase):
    size_in = x.shape[1]
    # torch.mm(input[:, i].reshape(-1,1), freq[0,:].reshape(1,-1)) concatenated
    inner = jnp.concatenate(
        [x[:, i:i + 1] * freq[0:1, :] for i in range(size_in)], axis=1)
    cos_arg = inner + (phase[0, :] if phase is not None else 0.0)
    sin_arg = inner + (phase[1, :] if phase is not None else 0.0)
    return jnp.concatenate([jnp.cos(cos_arg), jnp.sin(sin_arg)], axis=1) * amp


if __name__ == "__main__":
    # Small config consistent with the module: 2 input features, 8 fourier
    # terms, phase_lag=True. Batch 256 with tb=128 -> lane-dense tiles and a
    # 2-step "parallel" grid.
    size_in, num_terms_req = 2, 8
    B, tb = 256, 128

    key = jax.random.PRNGKey(0)
    k_param, k_x = jax.random.split(key)
    freq, amp, phase, num_terms = init_params(k_param, size_in, num_terms_req,
                                              phase_lag=True)
    kparams = prepare_kernel_params(freq, amp, phase, size_in)
    x = jax.random.uniform(k_x, (B, size_in), jnp.float32)

    out = fourier_forward(x, kparams, tb=tb)
    out = jax.block_until_ready(out)

    ref = fourier_reference(x, freq, amp, phase)
    assert out.shape == (B, num_terms * size_in)
    assert jnp.allclose(out, ref, atol=1e-5, rtol=1e-5), "kernel mismatch vs reference"

    print("KERNEL_OK")
</pallas_src>

<mosaic_0001>
module attributes {stable_mosaic.version = 11 : i64} {
  func.func @fourier_kernel(%arg0: i32, %arg1: memref<2x128xf32, #tpu.memory_space<vmem>>, %arg2: memref<8x2xf32, #tpu.memory_space<vmem>>, %arg3: memref<8x1xf32, #tpu.memory_space<vmem>>, %arg4: memref<8x1xf32, #tpu.memory_space<vmem>>, %arg5: memref<8x1xf32, #tpu.memory_space<vmem>>, %arg6: memref<8x1xf32, #tpu.memory_space<vmem>>, %arg7: memref<16x128xf32, #tpu.memory_space<vmem>>) attributes {dimension_semantics = [#tpu.dimension_semantics<parallel>], iteration_bounds = array<i64: 2>, scalar_prefetch = 0 : i64, scratch_operands = 0 : i64, tpu.core_type = #tpu.core_type<tc>, window_params = [{transform_indices = @transform_0, window_bounds = array<i64: 2, 128>}, {pipeline_mode = #tpu.pipeline_mode<synchronous>, transform_indices = @transform_1, window_bounds = array<i64: 8, 2>}, {pipeline_mode = #tpu.pipeline_mode<synchronous>, transform_indices = @transform_2, window_bounds = array<i64: 8, 1>}, {pipeline_mode = #tpu.pipeline_mode<synchronous>, transform_indices = @transform_3, window_bounds = array<i64: 8, 1>}, {pipeline_mode = #tpu.pipeline_mode<synchronous>, transform_indices = @transform_4, window_bounds = array<i64: 8, 1>}, {pipeline_mode = #tpu.pipeline_mode<synchronous>, transform_indices = @transform_5, window_bounds = array<i64: 8, 1>}, {transform_indices = @transform_6, window_bounds = array<i64: 16, 128>}]} {
    %c0 = arith.constant 0 : index
    %c0_0 = arith.constant 0 : index
    %0 = vector.load %arg1[%c0, %c0_0] : memref<2x128xf32, #tpu.memory_space<vmem>>, vector<2x128xf32>
    %c0_1 = arith.constant 0 : index
    %c0_2 = arith.constant 0 : index
    %1 = vector.load %arg2[%c0_1, %c0_2] : memref<8x2xf32, #tpu.memory_space<vmem>>, vector<8x2xf32>
    %cst = arith.constant dense<0.000000e+00> : vector<8x128xf32>
    %2 = tpu.matmul %1, %0, %cst {dimension_numbers = #tpu.dot_dimension_numbers<[1], [0], [0], [1], [0, 0, 1, 1], [], []>} : vector<8x2xf32>, vector<2x128xf32>, vector<8x128xf32> -> vector<8x128xf32>
    %c0_3 = arith.constant 0 : index
    %c0_4 = arith.constant 0 : index
    %3 = vector.load %arg3[%c0_3, %c0_4] : memref<8x1xf32, #tpu.memory_space<vmem>>, vector<8x1xf32>
    %4 = vector.broadcast %3 : vector<8x1xf32> to vector<8x128xf32>
    %5 = arith.addf %2, %4 : vector<8x128xf32>
    %6 = math.cos %5 : vector<8x128xf32>
    %c0_5 = arith.constant 0 : index
    %c0_6 = arith.constant 0 : index
    %7 = vector.load %arg5[%c0_5, %c0_6] : memref<8x1xf32, #tpu.memory_space<vmem>>, vector<8x1xf32>
    %8 = vector.broadcast %7 : vector<8x1xf32> to vector<8x128xf32>
    %9 = arith.mulf %6, %8 : vector<8x128xf32>
    %c0_7 = arith.constant 0 : index
    %c0_8 = arith.constant 0 : index
    %10 = vector.load %arg4[%c0_7, %c0_8] : memref<8x1xf32, #tpu.memory_space<vmem>>, vector<8x1xf32>
    %11 = vector.broadcast %10 : vector<8x1xf32> to vector<8x128xf32>
    %12 = arith.addf %2, %11 : vector<8x128xf32>
    %13 = math.sin %12 : vector<8x128xf32>
    %c0_9 = arith.constant 0 : index
    %c0_10 = arith.constant 0 : index
    %14 = vector.load %arg6[%c0_9, %c0_10] : memref<8x1xf32, #tpu.memory_space<vmem>>, vector<8x1xf32>
    %15 = vector.broadcast %14 : vector<8x1xf32> to vector<8x128xf32>
    %16 = arith.mulf %13, %15 : vector<8x128xf32>
    %17 = tpu.concatenate %9, %16 in 0 : vector<8x128xf32>, vector<8x128xf32> -> vector<16x128xf32>
    %c0_11 = arith.constant 0 : index
    %c0_12 = arith.constant 0 : index
    %18 = vector.load %arg7[%c0_11, %c0_12] : memref<16x128xf32, #tpu.memory_space<vmem>>, vector<16x128xf32>
    tpu.vector_store %arg7[%c0_11, %c0_12], %17 {strides = array<i32>} : memref<16x128xf32, #tpu.memory_space<vmem>>, vector<16x128xf32>,
    return
  }
  func.func @transform_0(%arg0: i32) -> (i32, i32) {
    %c0_i32 = arith.constant 0 : i32
    %c0_i32_0 = arith.constant 0 : i32
    return %c0_i32, %arg0 : i32, i32
  }
  func.func @transform_1(%arg0: i32) -> (i32, i32) {
    %c0_i32 = arith.constant 0 : i32
    %c0_i32_0 = arith.constant 0 : i32
    %c0_i32_1 = arith.constant 0 : i32
    return %c0_i32, %c0_i32_0 : i32, i32
  }
  func.func @transform_2(%arg0: i32) -> (i32, i32) {
    %c0_i32 = arith.constant 0 : i32
    %c0_i32_0 = arith.constant 0 : i32
    %c0_i32_1 = arith.constant 0 : i32
    return %c0_i32, %c0_i32_0 : i32, i32
  }
  func.func @transform_3(%arg0: i32) -> (i32, i32) {
    %c0_i32 = arith.constant 0 : i32
    %c0_i32_0 = arith.constant 0 : i32
    %c0_i32_1 = arith.constant 0 : i32
    return %c0_i32, %c0_i32_0 : i32, i32
  }
  func.func @transform_4(%arg0: i32) -> (i32, i32) {
    %c0_i32 = arith.constant 0 : i32
    %c0_i32_0 = arith.constant 0 : i32
    %c0_i32_1 = arith.constant 0 : i32
    return %c0_i32, %c0_i32_0 : i32, i32
  }
  func.func @transform_5(%arg0: i32) -> (i32, i32) {
    %c0_i32 = arith.constant 0 : i32
    %c0_i32_0 = arith.constant 0 : i32
    %c0_i32_1 = arith.constant 0 : i32
    return %c0_i32, %c0_i32_0 : i32, i32
  }
  func.func @transform_6(%arg0: i32) -> (i32, i32) {
    %c0_i32 = arith.constant 0 : i32
    %c0_i32_0 = arith.constant 0 : i32
    return %c0_i32, %arg0 : i32, i32
  }
}

</mosaic_0001>

<bundles_post_ra>
// kernel: tpu_custom_call.1
= control target key start
LH: loop header
LB: loop body
LE: loop exit
PB: predicated region body
PF: predicated region fallthrough
CT: control target
= control target key end

     0   :  { %11 = vsyncpa [#allocation3], 0  ;;  %s1165_s0 = inlined_call_operand.vmem [shape: f32[2,256], index: 0, kind: input, shape index: {}]   ;;  %s1166_s1 = inlined_call_operand.vmem [shape: f32[8,2], index: 1, kind: input, shape index: {}]   ;;  %s1167_s2 = inlined_call_operand.vmem [shape: f32[8,1], index: 2, kind: input, shape index: {}]   ;;  %s1168_s3 = inlined_call_operand.vmem [shape: f32[8,1], index: 3, kind: input, shape index: {}]   ;;  %s1169_s4 = inlined_call_operand.vmem [shape: f32[8,1], index: 4, kind: input, shape index: {}]   ;;  %s1170_s5 = inlined_call_operand.vmem [shape: f32[8,1], index: 5, kind: input, shape index: {}]   ;;  %s1171_s6 = inlined_call_operand.hbm [shape: f32[16,256], index: 6, kind: output, shape index: {}]  }
   0x1   :  { %13 = vsyncpa [#allocation3 + $0x1], 0  ;;  %s871_s21 = smov 0   ;;  %s873_s22 = smov 0  }
   0x2   :  { %s875_s23 = smov 0   ;;  %s877_s24 = smov 0  }
   0x3 LB: > { %s892_s25 = sadd.s32 4294967295, %s824_s24   ;;  %s693_s26 = sadd.s32 4294967294, %s824_s24   ;;  %s824_s24 = sphi %s877_s24, %s1181_s24   ;;  %s820_s23 = sphi %s875_s23, %s1180_s23   ;;  %s816_s22 = sphi %s873_s22, %s1179_s22   ;;  %s812_s21 = sphi %s871_s21, %s1178_s21  }
   0x4   : > { %s896_s27 = sadd.s32 1, %s824_s24   ;;  %s157_s28 = sadd.s32 1, %s820_s23 }
   0x5   : > { %s154_s29 = ssub.s32 %s824_s24, %s896_s27  ;;  %p167_p0 = scmp.ne.s32.totalorder %s820_s23, %s816_s22 }
   0x6   : > { %p155_p1 = scmp.eq.s32.totalorder %s154_s29, 0  ;;  %p168_p2 = scmp.eq.s32.totalorder %s892_s25, 1 }
   0x7   : > { %p173_p3 = scmp.ne.s32.totalorder %s816_s22, %s812_s21  ;;  %p174_p4 = scmp.eq.s32.totalorder %s693_s26, 1 }
   0x8   : > { %s907_s30 = scalar_select %p155_p1, %s820_s23, %s157_s28  }
   0x9   : > { %p909_p5 = por %p168_p2, %p167_p0  ;;  %p913_p6 = por %p174_p4, %p173_p3 }
   0xa   : > { %p696_p7 = scmp.ge.s32.totalorder %s824_s24, 1  ;;  %p214_p8 = scmp.lt.s32.totalorder %s824_s24, 3 }
   0xc   : > { %p215_p9 = pnand %p696_p7, %p214_p8 }
   0xd   : > { %p243_p10 = scmp.lt.s32.totalorder (!%p215_p9), %s892_s25, 1  ;;  %s240_s9 = sand.u32 (!%p215_p9), 1, %s816_s22  }
   0xe   : > { %218 = sbr.rel (%p215_p9) target bundleno = 273 (0x111), region = 44  ;;  %s697_s10 = sshll.u32 (!%p215_p9), %s240_s9, 4 }
   0xf   : > { %s1124_s11 = scalar_lea.vmem (!%p215_p9), [#allocation2], %s697_s10  ;;  %s708_s12 = sshll.u32 (!%p215_p9), %s892_s25, 3 }
  0x10   : > { %s627_s15 = scalar_lea.hbm (!%p215_p9), %s1171_s6, %s708_s12  ;;  %s628_s16 = sshll.u32 (!%p215_p9), %s1124_s11, 4  ;;  %s629_s16 = int_to_ptr.vmem [resolvable:$true] %s628_s16 }
  0x11   : > { %s782_s28 = scalar_lea.hbm (!%p215_p9), %s1171_s6, 32 }
  0x13   : > { %v277_v0 = vld [vmem:[%s1167_s2] sm:$0xff]  ;;  %v826_v1 = vmov 0   ;;  %s244_s13 = scalar_select %p243_p10, %s892_s25, 1  ;;  %vm253_vm0 = vcmask 1041408   ;;  %vm249_vm1 = vcmask 15360  }
  0x14   : > { %760 = vset.pattern.permute.xlu0 %v826_v1  ;;  %761 = vset.pattern.permute.xlu1 %v826_v1  ;;  %v438_v2 = vld [vmem:[%s1169_s4] sm:$0xff]  ;;  %v827_v33 = vmov 2102212464   ;;  %v828_v38 = vmov 920167782   ;;  %s617_s25 = scalar_lea.sflag [#allocation3], %s240_s9 }
  0x15   : > { %280 = vperm.xlu0 %760, %v277_v0   ;;  %441 = vperm.xlu1 %761, %v438_v2   ;;  %s698_s14 = sshll.u32 %s244_s13, 1  ;;  %v248_v3 = vld [vmem:[%s1166_s1] sm:$0xff]  ;;  %v829_v41 = vmov 1326507024   ;;  %v830_v45 = vmov 683565275  }
  0x16   : > { %s246_s17 = scalar_lea.vmem %s1165_s0, %s698_s14  ;;  %v445_v5 = vld [vmem:[%s1168_s3] sm:$0xff]  ;;  %v831_v47 = vmov 2475754826   ;;  %v832_v52 = vmov 2131351028  }
  0x17   : > { %v247_v4 = vld [vmem:[%s246_s17] sm:$0x3]  ;;  %s630_s17 = sshll.u32 %s627_s15, 4  ;;  %s631_s17 = int_to_ptr.hbm [resolvable:$true] %s630_s17 }
  0x18   : > { %699 = vmatpush.msk.msra.mxu0 %vm253_vm0, %v247_v4  ;;  %v607_v6 = vld [vmem:[%s1170_s5] sm:$0xff]  ;;  %s776_s18 = sshra.s32 %s631_s17, 4  ;;  %s777_s18 = int_to_ptr.hbm [resolvable:$true] %s776_s18 }
  0x19   : > { %700 = vmatmul.msk.f32.vlgmr.msra.gmra.mxu0 %vm249_vm1, %v248_v3  ;;  %s778_s19 = scalar_lea.hbm %s777_s18, 16  ;;  %p783_p0 = scmp.lt.s32.totalorder %s777_s18, %s1171_s6 }
  0x1a   : > { %p779_p11 = scmp.ne.s32.totalorder %s777_s18, %s778_s19  ;;  %p784_p1 = scmp.lt.s32.totalorder %s782_s28, %s778_s19 }
  0x1c   : > { %p780_p12 = pnand %p779_p11, %p909_p5  ;;  %p785_p2 = por %p784_p1, %p783_p0 }
  0x1d   : > { %448 = vperm.xlu0 %760, %v445_v5   ;;  %610 = vperm.xlu1 %761, %v607_v6  }
  0x1e   : > { %p781_p13 = pneg %p780_p12 }
  0x20   : > { %p786_p3 = pnand %p785_p2, %p781_p13 }
  0x87   : > { %v281_v7 = vpop.permute.xlu0 %280 }
  0x8f   : > { %v449_v8 = vpop.permute.xlu0 %448 }
  0x96   : > { %v274_v9 = vpop.f32.mrf.mxu0 }
  0x97   : > { %v941_v10 = vadd.f32 %v281_v7, %v274_v9  ;;  %v943_v11 = vadd.f32 %v449_v8, %v274_v9 }
  0x99   : > { %v287_v12 = vand.u32 2139095040, %v941_v10  ;;  %v455_v13 = vand.u32 2139095040, %v943_v11  ;;  %v284_v14 = vand.u32 2147483647, %v941_v10  ;;  %v452_v15 = vand.u32 2147483647, %v943_v11 }
  0x9b   : > { %v288_v16 = vshrl.u32 %v287_v12, 23  ;;  %v456_v17 = vshrl.u32 %v455_v13, 23  ;;  %v291_v18 = vand.u32 8388607, %v284_v14  ;;  %v459_v22 = vand.u32 8388607, %v452_v15 }
  0x9d   : > { %v701_v19 = vadd.s32 4294967169, %v288_v16  ;;  %v704_v20 = vadd.s32 4294967169, %v456_v17  ;;  %v292_v21 = vor.u32 8388608, %v291_v18  ;;  %v460_v28 = vor.u32 8388608, %v459_v22 }
  0x9f   : > { %v294_v23 = vadd.s32 1, %v701_v19  ;;  %v462_v24 = vadd.s32 1, %v704_v20  ;;  %v953_v27 = vshll.u32 %v292_v21, 8  ;;  %v964_v37 = vshll.u32 %v460_v28, 8 }
  0xa1   : > { %vm295_vm2 = vcmp.gt.s32.totalorder %v294_v23, 0  ;;  %vm463_vm3 = vcmp.gt.s32.totalorder %v462_v24, 0  ;;  %v333_v36 = vand.u32 65535, %v953_v27  ;;  %v334_v0 = vshrl.u32 %v953_v27, 16 }
  0xa2   : > { %v296_v25 = vsel %vm295_vm2, %v294_v23, 0  ;;  %v464_v26 = vsel %vm463_vm3, %v462_v24, 0 }
  0xa3   : > { %v955_v29 = vshrl.u32 %v296_v25, 5  ;;  %v298_v30 = vand.u32 31, %v296_v25  ;;  %v957_v31 = vand.u32 31, %v464_v26  ;;  %v980_v62 = vshrl.u32 %v464_v26, 5 }
  0xa5   : > { %v299_v32 = vsub.s32 32, %v298_v30  ;;  %v310_v34 = vshll.u32 %v827_v33, %v298_v30  ;;  %v961_v35 = vsub.s32 32, %v957_v31  ;;  %v313_v40 = vshll.u32 %v828_v38, %v298_v30 }
  0xa6   : > { %vm319_vm4 = vcmp.lt.s32.totalorder %v955_v29, 4  ;;  %v301_v46 = vshll.u32 %v830_v45, %v298_v30  ;;  %v304_v51 = vshll.u32 %v831_v47, %v298_v30  ;;  %v478_v54 = vshll.u32 %v827_v33, %v957_v31 }
  0xa7   : > { %v311_v39 = vshrl.u32 %v828_v38, %v299_v32  ;;  %v314_v42 = vshrl.u32 %v829_v41, %v299_v32  ;;  %v479_v43 = vshrl.u32 %v828_v38, %v961_v35  ;;  %v482_v44 = vshrl.u32 %v829_v41, %v961_v35 }
  0xa8   : > { %v302_v48 = vshrl.u32 %v831_v47, %v299_v32  ;;  %v305_v53 = vshrl.u32 %v832_v52, %v299_v32  ;;  %v307_v56 = vshll.u32 %v832_v52, %v298_v30  ;;  %v308_v57 = vshrl.u32 %v827_v33, %v299_v32 }
  0xa9   : > { %v312_v49 = vor.u32 %v311_v39, %v310_v34  ;;  %v315_v50 = vor.u32 %v314_v42, %v313_v40  ;;  %v481_v60 = vshll.u32 %v828_v38, %v957_v31  ;;  %vm316_vm5 = vcmp.lt.s32.totalorder %v955_v29, 1 }
  0xaa   : > { %v303_v55 = vor.u32 %v302_v48, %v301_v46  ;;  %v306_v61 = vor.u32 %v305_v53, %v304_v51  ;;  %v309_v63 = vor.u32 %v308_v57, %v307_v56  ;;  %v984_v2 = vor.u32 %v479_v43, %v478_v54 }
  0xab   : > { %v325_v58 = vsel %vm319_vm4, %v312_v49, 920167782  ;;  %v329_v59 = vsel %vm319_vm4, %v315_v50, 1326507024  ;;  %v483_v3 = vor.u32 %v482_v44, %v481_v60  ;;  %vm318_vm6 = vcmp.lt.s32.totalorder %v955_v29, 3 }
  0xac   : > { %v324_v4 = vsel %vm316_vm5, %v303_v55, %v306_v61  ;;  %vm317_vm7 = vcmp.lt.s32.totalorder %v955_v29, 2  ;;  %v326_v5 = vsel %vm318_vm6, %v309_v63, %v325_v58  ;;  %v328_v6 = vsel %vm316_vm5, %v306_v61, %v309_v63 }
  0xad   : > { %v330_v7 = vsel %vm318_vm6, %v312_v49, %v329_v59  ;;  %v300_v8 = vshrl.u32 %v830_v45, %v299_v32  ;;  %v321_v9 = vsel %vm319_vm4, %v309_v63, 2102212464  ;;  %v327_v12 = vsel %vm317_vm7, %v324_v4, %v326_v5 }
  0xae   : > { %v331_v13 = vsel %vm317_vm7, %v328_v6, %v330_v7  ;;  %vm487_vm8 = vcmp.lt.s32.totalorder %v980_v62, 4  ;;  %v357_v18 = vand.u32 65535, %v327_v12  ;;  %v358_v22 = vshrl.u32 %v327_v12, 16 }
  0xaf   : > { %v335_v16 = vand.u32 65535, %v331_v13  ;;  %v336_v17 = vshrl.u32 %v331_v13, 16  ;;  %v493_v19 = vsel %vm487_vm8, %v984_v2, 920167782  ;;  %v497_v20 = vsel %vm487_vm8, %v483_v3, 1326507024 }
  0xb0   : > { %v320_v21 = vsel %vm316_vm5, %v300_v8, %v303_v55  ;;  %v322_v23 = vsel %vm318_vm6, %v306_v61, %v321_v9  ;;  %v469_v26 = vshll.u32 %v830_v45, %v957_v31  ;;  %v360_v28 = vmul.u32 %v358_v22, %v333_v36 }
  0xb1   : > { %v338_v24 = vmul.u32 %v336_v17, %v333_v36  ;;  %v339_v25 = vmul.u32 %v335_v16, %v334_v0  ;;  %v361_v30 = vmul.u32 %v357_v18, %v334_v0  ;;  %v470_v32 = vshrl.u32 %v831_v47, %v961_v35 }
  0xb2   : > { %v472_v34 = vshll.u32 %v831_v47, %v957_v31  ;;  %v337_v38 = vmul.u32 %v335_v16, %v333_v36  ;;  %v340_v39 = vmul.u32 %v336_v17, %v334_v0  ;;  %v359_v41 = vmul.u32 %v357_v18, %v333_v36 }
  0xb3   : > { %v341_v40 = vshll.u32 %v338_v24, 16  ;;  %v342_v42 = vshrl.u32 %v338_v24, 16  ;;  %v343_v43 = vshll.u32 %v339_v25, 16  ;;  %v362_v44 = vmul.u32 %v358_v22, %v334_v0 }
  0xb4   : > { %v363_v46 = vshll.u32 %v360_v28, 16  ;;  %v365_v49 = vshll.u32 %v361_v30, 16  ;;  %v473_v50 = vshrl.u32 %v832_v52, %v961_v35  ;;  %v1020_v54 = vor.u32 %v470_v32, %v469_v26 }
  0xb5   : > { %vm345_vm9 = vc.u32 %v337_v38, %v341_v40  ;;  %v347_v48 = vadd.s32 %v341_v40, %v337_v38  ;;  %v344_v56 = vshrl.u32 %v339_v25, 16  ;;  %v475_v61 = vshll.u32 %v832_v52, %v957_v31 }
  0xb6   : > { %v346_v51 = vsel %vm345_vm9, 1, %v826_v1  ;;  %vm367_vm10 = vc.u32 %v359_v41, %v363_v46  ;;  %v369_v53 = vadd.s32 %v363_v46, %v359_v41  ;;  %v1023_v55 = vor.u32 %v473_v50, %v472_v34 }
  0xb7   : > { %v348_v47 = vadd.s32 %v346_v51, %v340_v39  ;;  %vm349_vm11 = vc.u32 %v347_v48, %v343_v43  ;;  %v368_v36 = vsel %vm367_vm10, 1, %v826_v1  ;;  %v476_v63 = vshrl.u32 %v827_v33, %v961_v35 }
  0xb8   : > { %v350_v57 = vsel %vm349_vm11, 1, %v826_v1  ;;  %v370_v58 = vadd.s32 %v368_v36, %v362_v44  ;;  %vm371_vm12 = vc.u32 %v369_v53, %v365_v49  ;;  %v364_v0 = vshrl.u32 %v360_v28, 16 }
  0xb9   : > { %v352_v59 = vadd.s32 %v350_v57, %v348_v47  ;;  %v372_v60 = vsel %vm371_vm12, 1, %v826_v1  ;;  %vm484_vm13 = vcmp.lt.s32.totalorder %v980_v62, 1  ;;  %vm486_vm14 = vcmp.lt.s32.totalorder %v980_v62, 3 }
  0xba   : > { %v374_v3 = vadd.s32 %v372_v60, %v370_v58  ;;  %v477_v5 = vor.u32 %v476_v63, %v475_v61  ;;  %v492_v6 = vsel %vm484_vm13, %v1020_v54, %v1023_v55  ;;  %v498_v31 = vsel %vm486_vm14, %v984_v2, %v497_v20 }
  0xbb   : > { %v353_v4 = vadd.s32 %v352_v59, %v342_v42  ;;  %v366_v52 = vshrl.u32 %v361_v30, 16  ;;  %v1040_v7 = vadd.s32 %v369_v53, %v365_v49  ;;  %vm485_vm15 = vcmp.lt.s32.totalorder %v980_v62, 2 }
  0xbc   : > { %v375_v33 = vadd.s32 %v374_v3, %v364_v0  ;;  %v494_v9 = vsel %vm486_vm14, %v477_v5, %v493_v19  ;;  %v496_v12 = vsel %vm484_vm13, %v1023_v55, %v477_v5  ;;  %v323_v13 = vsel %vm317_vm7, %v320_v21, %v322_v23 }
  0xbd   : > { %v1042_v8 = vadd.s32 %v353_v4, %v344_v56  ;;  %v495_v2 = vsel %vm485_vm15, %v492_v6, %v494_v9  ;;  %v499_v17 = vsel %vm485_vm15, %v496_v12, %v498_v31  ;;  %v501_v18 = vand.u32 65535, %v964_v37 }
  0xbe   : > { %v376_v16 = vadd.s32 %v375_v33, %v366_v52  ;;  %v502_v19 = vshrl.u32 %v964_v37, 16  ;;  %v503_v20 = vand.u32 65535, %v499_v17  ;;  %v504_v24 = vshrl.u32 %v499_v17, 16 }
  0xbf   : > { %vm379_vm0 = vc.u32 %v1042_v8, %v1040_v7  ;;  %v525_v25 = vand.u32 65535, %v495_v2  ;;  %v526_v29 = vshrl.u32 %v495_v2, 16  ;;  %v377_v21 = vmul.u32 %v953_v27, %v323_v13 }
  0xc0   : > { %v380_v22 = vadd.s32 1, %v376_v16  ;;  %v506_v26 = vmul.u32 %v504_v24, %v501_v18  ;;  %v507_v28 = vmul.u32 %v503_v20, %v502_v19  ;;  %v505_v34 = vmul.u32 %v503_v20, %v501_v18 }
  0xc1   : > { %v528_v32 = vmul.u32 %v526_v29, %v501_v18  ;;  %v529_v39 = vmul.u32 %v525_v25, %v502_v19  ;;  %v508_v41 = vmul.u32 %v504_v24, %v502_v19  ;;  %v527_v42 = vmul.u32 %v525_v25, %v501_v18 }
  0xc2   : > { %v381_v23 = vsel %vm379_vm0, %v380_v22, %v376_v16  ;;  %v509_v38 = vshll.u32 %v506_v26, 16  ;;  %v511_v44 = vshll.u32 %v507_v28, 16  ;;  %v530_v48 = vmul.u32 %v526_v29, %v502_v19 }
  0xc3   : > { %v382_v30 = vadd.s32 %v381_v23, %v377_v21  ;;  %v531_v43 = vshll.u32 %v528_v32, 16  ;;  %v533_v53 = vshll.u32 %v529_v39, 16  ;;  %v489_v58 = vsel %vm487_vm8, %v477_v5, 2102212464 }
  0xc4   : > { %vm513_vm1 = vc.u32 %v505_v34, %v509_v38  ;;  %v515_v46 = vadd.s32 %v509_v38, %v505_v34  ;;  %v510_v59 = vshrl.u32 %v506_v26, 16  ;;  %v468_v63 = vshrl.u32 %v830_v45, %v961_v35 }
  0xc5   : > { %v383_v40 = vadd.s32 536870912, %v382_v30  ;;  %v514_v27 = vsel %vm513_vm1, 1, %v826_v1  ;;  %vm535_vm2 = vc.u32 %v527_v42, %v531_v43  ;;  %v537_v50 = vadd.s32 %v531_v43, %v527_v42 }
  0xc6   : > { %v516_v51 = vadd.s32 %v514_v27, %v508_v41  ;;  %vm517_vm3 = vc.u32 %v515_v46, %v511_v44  ;;  %v536_v47 = vsel %vm535_vm2, 1, %v826_v1  ;;  %v512_v3 = vshrl.u32 %v507_v28, 16 }
  0xc7   : > { %v1061_v49 = vshrl.u32 %v383_v40, 30  ;;  %v518_v56 = vsel %vm517_vm3, 1, %v826_v1  ;;  %v538_v57 = vadd.s32 %v536_v47, %v530_v48  ;;  %vm539_vm4 = vc.u32 %v537_v50, %v533_v53 }
  0xc8   : > { %v520_v60 = vadd.s32 %v518_v56, %v516_v51  ;;  %v540_v0 = vsel %vm539_vm4, 1, %v826_v1  ;;  %v532_v6 = vshrl.u32 %v528_v32, 16  ;;  %v488_v33 = vsel %vm484_vm13, %v468_v63, %v1020_v54 }
  0xc9   : > { %v385_v36 = vshll.u32 %v1061_v49, 30  ;;  %v542_v31 = vadd.s32 %v540_v0, %v538_v57  ;;  %v490_v5 = vsel %vm486_vm14, %v1023_v55, %v489_v58  ;;  %v534_v12 = vshrl.u32 %v529_v39, 16 }
  0xca   : > { %v521_v4 = vadd.s32 %v520_v60, %v510_v59  ;;  %v541_v45 = vadd.s32 %v537_v50, %v533_v53  ;;  %v491_v16 = vsel %vm485_vm15, %v488_v33, %v490_v5  ;;  %v378_v55 = vadd.s32 %v1040_v7, %v1042_v8 }
  0xcb   : > { %v386_v61 = vsub.s32 %v382_v30, %v385_v36  ;;  %v543_v13 = vadd.s32 %v542_v31, %v532_v6  ;;  %v545_v19 = vmul.u32 %v964_v37, %v491_v16  ;;  %vm286_vm9 = vcmp.lt.s32.totalorder %v941_v10, 0 }
  0xcc   : > { %v522_v9 = vadd.s32 %v521_v4, %v512_v3  ;;  %vm1089_vm10 = vcmp.le.f32.partialorder %v284_v14, 0.7853982  ;;  %v408_v14 = vsub.s32 4, %v1061_v49  ;;  %vm454_vm12 = vcmp.lt.s32.totalorder %v943_v11, 0 }
  0xcd   : > { %vm387_vm5 = vcmp.lt.s32.totalorder %v386_v61, 0  ;;  %v388_v52 = vsub.s32 0, %v386_v61  ;;  %v544_v2 = vadd.s32 %v543_v13, %v534_v12  ;;  %vm1108_vm13 = vcmp.le.f32.partialorder %v452_v15, 0.7853982 }
  0xce   : > { %vm547_vm6 = vc.u32 %v522_v9, %v541_v45  ;;  %v546_v47 = vadd.s32 %v541_v45, %v522_v9  ;;  %v409_v3 = vsel %vm286_vm9, %v408_v14, %v1061_v49  ;;  %vm427_vm1 = vweird.f32 %v941_v10 }
  0xcf   : > { %v389_v35 = vsel %vm387_vm5, %v388_v52, %v386_v61  ;;  %v548_v18 = vadd.s32 1, %v544_v2  ;;  %v411_v5 = vsel %vm1089_vm10, 0, %v409_v3  ;;  %vm595_vm5 = vweird.f32 %v943_v11 }
  0xd0   : > { %v390_v1 = vclz %v389_v35  ;;  %v428_v16 = vand.u32 3, %v411_v5 }
  0xd1   : > { %v549_v54 = vsel %vm547_vm6, %v548_v18, %v544_v2 }
  0xd2   : > { %v702_v17 = vadd.s32 4294967294, %v390_v1  ;;  %v550_v22 = vadd.s32 %v549_v54, %v545_v19  ;;  %vm429_vm14 = vcmp.lt.s32.totalorder %v428_v16, 2  ;;  %vm430_vm15 = vcmp.eq.s32.totalorder %v428_v16, 0 }
  0xd3   : > { %vm433_vm0 = vcmp.eq.s32.totalorder %v428_v16, 2 }
  0xd4   : > { %vm703_vm7 = vcmp.lt.s32.totalorder %v702_v17, 0  ;;  %v551_v29 = vadd.s32 536870912, %v550_v22 }
  0xd5   : > { %v393_v20 = vsel %vm703_vm7, 0, %v702_v17 }
  0xd6   : > { %v394_v24 = vsub.s32 32, %v393_v20  ;;  %v398_v25 = vsub.s32 4294967266, %v393_v20  ;;  %v395_v21 = vshll.u32 %v386_v61, %v393_v20  ;;  %v1083_v26 = vshrl.u32 %v551_v29, 30 }
  0xd8   : > { %v396_v23 = vshrl.u32 %v378_v55, %v394_v24  ;;  %v399_v62 = vadd.s32 127, %v398_v25  ;;  %v553_v32 = vshll.u32 %v1083_v26, 30  ;;  %v576_v24 = vsub.s32 4, %v1083_v26 }
  0xda   : > { %v397_v28 = vor.u32 %v396_v23, %v395_v21  ;;  %v400_v30 = vshll.u32 %v399_v62, 23  ;;  %v554_v34 = vsub.s32 %v550_v22, %v553_v32  ;;  %v442_v21 = vpop.permute.xlu1 %441  ;;  %v577_v32 = vsel %vm454_vm12, %v576_v24, %v1083_v26 }
  0xdc   : > { %v401_v37 = vor.u32 4788187, %v400_v30  ;;  %v404_v39 = vcvt.s32.f32 %v397_v28  ;;  %vm555_vm8 = vcmp.lt.s32.totalorder %v554_v34, 0  ;;  %v556_v40 = vsub.s32 0, %v554_v34 }
  0xde   : > { %v402_v38 = vand.u32 2147483647, %v401_v37  ;;  %v557_v7 = vsel %vm555_vm8, %v556_v40, %v554_v34 }
  0xdf   : > { %v558_v42 = vclz %v557_v7 }
  0xe0   : > { %v405_v41 = vmul.f32 %v404_v39, %v402_v38 }
  0xe1   : > { %v705_v46 = vadd.s32 4294967294, %v558_v42 }
  0xe2   : > { %v406_v8 = vxor.u32 2147483648, %v405_v41 }
  0xe3   : > { %vm706_vm11 = vcmp.lt.s32.totalorder %v705_v46, 0 }
  0xe4   : > { %v407_v44 = vsel %vm286_vm9, %v406_v8, %v405_v41  ;;  %v561_v50 = vsel %vm706_vm11, 0, %v705_v46 }
  0xe5   : > { %v410_v48 = vsel %vm1089_vm10, %v941_v10, %v407_v44  ;;  %v562_v36 = vsub.s32 32, %v561_v50  ;;  %v566_v56 = vsub.s32 4294967266, %v561_v50  ;;  %v563_v60 = vshll.u32 %v554_v34, %v561_v50 }
  0xe6   : > { %v412_v27 = vmul.f32 %v410_v48, %v410_v48  ;;  %v579_v10 = vsel %vm1108_vm13, 0, %v577_v32 }
  0xe7   : > { %v564_v59 = vshrl.u32 %v546_v47, %v562_v36  ;;  %v567_v61 = vadd.s32 127, %v566_v56  ;;  %v596_v7 = vadd.s32 3, %v579_v10  ;;  %v611_v47 = vpop.permute.xlu1 %610 }
  0xe8   : > { %v413_v51 = vmul.f32 -0.001358992, %v412_v27  ;;  %v420_v53 = vmul.f32 -0.00019511016, %v412_v27 }
  0xe9   : > { %v565_v4 = vor.u32 %v564_v59, %v563_v60  ;;  %v568_v6 = vshll.u32 %v567_v61, 23  ;;  %v597_v44 = vand.u32 3, %v596_v7 }
  0xea   : > { %v414_v57 = vadd.f32 0.041655596, %v413_v51  ;;  %v421_v58 = vadd.f32 0.008332121, %v420_v53 }
  0xeb   : > { %v569_v33 = vor.u32 4788187, %v568_v6  ;;  %v572_v35 = vcvt.s32.f32 %v565_v4  ;;  %vm599_vm2 = vcmp.eq.s32.totalorder %v597_v44, 0  ;;  %vm602_vm3 = vcmp.eq.s32.totalorder %v597_v44, 2 }
  0xec   : > { %v415_v63 = vmul.f32 %v414_v57, %v412_v27  ;;  %v422_v0 = vmul.f32 %v421_v58, %v412_v27  ;;  %vm598_vm4 = vcmp.lt.s32.totalorder %v597_v44, 2 }
  0xed   : > { %v570_v13 = vand.u32 2147483647, %v569_v33 }
  0xee   : > { %v416_v31 = vadd.f32 -0.4999988, %v415_v63  ;;  %v423_v52 = vadd.f32 -0.16666654, %v422_v0 }
  0xef   : > { %v573_v2 = vmul.f32 %v572_v35, %v570_v13 }
  0xf0   : > { %v417_v9 = vmul.f32 %v416_v31, %v412_v27  ;;  %v424_v12 = vmul.f32 %v423_v52, %v412_v27 }
  0xf1   : > { %v574_v18 = vxor.u32 2147483648, %v573_v2 }
  0xf2   : > { %v418_v45 = vadd.f32 1.0, %v417_v9  ;;  %v425_v1 = vadd.f32 1.0, %v424_v12 }
  0xf3   : > { %v575_v20 = vsel %vm454_vm12, %v574_v18, %v573_v2 }
  0xf4   : > { %v426_v17 = vmul.f32 %v425_v1, %v410_v48  ;;  %v434_v49 = vxor.u32 2147483648, %v418_v45  ;;  %v578_v25 = vsel %vm1108_vm13, %v943_v11, %v575_v20 }
  0xf5   : > { %v580_v29 = vmul.f32 %v578_v25, %v578_v25 }
  0xf6   : > { %v431_v19 = vxor.u32 2147483648, %v426_v17  ;;  %v435_v55 = vsel %vm433_vm0, %v434_v49, %v426_v17 }
  0xf7   : > { %v581_v28 = vmul.f32 -0.001358992, %v580_v29  ;;  %v588_v30 = vmul.f32 -0.00019511016, %v580_v29 }
  0xf8   : > { %v432_v22 = vsel %vm430_vm15, %v418_v45, %v431_v19 }
  0xf9   : > { %v436_v15 = vsel %vm429_vm14, %v432_v22, %v435_v55  ;;  %v582_v37 = vadd.f32 0.041655596, %v581_v28  ;;  %v589_v34 = vadd.f32 0.008332121, %v588_v30 }
  0xfa   : > { %v437_v23 = vsel %vm427_vm1, nan, %v436_v15 }
  0xfb   : > { %v444_v62 = vmul.f32 %v442_v21, %v437_v23  ;;  %v583_v38 = vmul.f32 %v582_v37, %v580_v29  ;;  %v590_v39 = vmul.f32 %v589_v34, %v580_v29 }
  0xfd   : > { %614 = vst [vmem:[%s1124_s11] sm:$0xff] %v444_v62  ;;  %v584_v40 = vadd.f32 -0.4999988, %v583_v38  ;;  %v591_v41 = vadd.f32 -0.16666654, %v590_v39 }
  0xff   : > { %v585_v8 = vmul.f32 %v584_v40, %v580_v29  ;;  %v592_v42 = vmul.f32 %v591_v41, %v580_v29 }
 0x101   : > { %v586_v43 = vadd.f32 1.0, %v585_v8  ;;  %v593_v26 = vadd.f32 1.0, %v592_v42 }
 0x103   : > { %v594_v46 = vmul.f32 %v593_v26, %v578_v25  ;;  %v603_v48 = vxor.u32 2147483648, %v586_v43 }
 0x105   : > { %v600_v27 = vxor.u32 2147483648, %v594_v46  ;;  %v604_v51 = vsel %vm602_vm3, %v603_v48, %v594_v46 }
 0x107   : > { %v601_v50 = vsel %vm599_vm2, %v586_v43, %v600_v27 }
 0x108   : > { %v605_v53 = vsel %vm598_vm4, %v601_v50, %v604_v51 }
 0x109   : > { %v606_v36 = vsel %vm595_vm5, nan, %v605_v53 }
 0x10a   : > { %v613_v14 = vmul.f32 %v611_v47, %v606_v36 }
 0x10c   : > { %615 = vst [vmem:[%s1124_s11 + $0x8] sm:$0xff] %v613_v14 }
 0x10d   : > { %789 = shalt.err (!%p786_p3)
}
 0x10e   : > { %s833_s9 = smov 128   ;;  %s834_s11 = smov 256  }
 0x10f   : > { %s835_s12 = smov 8  }
 0x110   : > { %711 = dma.vmem_to_hbm [thread:$0]  (%p909_p5), %s629_s16, 256, %s631_s17, %s617_s25, %s833_s9, %s834_s11, %s835_s12  }
 0x111 PF: > { %p717_p4 = scmp.ge.s32.totalorder %s824_s24, 2  ;;  %s645_s13 = sand.u32 1, %s812_s21  }
 0x112   : > { %s646_s14 = scalar_lea.sflag [#allocation3], %s645_s13 }
 0x113   : > { %p714_p7 = pnand %p717_p4, %p913_p6 }
 0x115   : > { %p715_p8 = pneg %p714_p7 }
 0x117   : > { %807 = dma.done.wait (%p715_p8), %s646_s14, 256  }
 0x118   : > { %809 = vsyncadd (%p715_p8), %s646_s14, 4294967040  ;;  %p16_p9 = scmp.ge.s32.totalorder %s896_s27, 4   ;;  %s1178_s21 = smov %s816_s22 }
 0x119   : > { %s1179_s22 = smov %s820_s23  ;;  %s1180_s23 = smov %s907_s30 }
 0x11a   : > { %s1181_s24 = smov %s896_s27  ;;  %18 = sbr.rel (!%p16_p9) target bundleno = 3 (0x3), region = 79 }
 0x11f   :  { %652 = vsyncpa [#allocation3], 1 }
 0x120   :  { %654 = vsyncpa [#allocation3 + $0x1], 1 }

</bundles_post_ra>
